<compile_context>
chip_gen: v6e
topology: v6e:2x2x1
jax: 0.10.0
libtpu: 0.0.40
codegen_flags: <defaults>
</compile_context>

<pallas_src>
import jax
import jax.numpy as jnp
from jax import lax
from jax.experimental import pallas as pl
from jax.experimental.pallas import tpu as pltpu

DIM_IN = 29
DIM_AUD = 64
WIN = 16
OUT_LANES = 128                 # lane-dense output store (dim_aud padded 64 -> 128)
MAX_BLOCK_B = 1024              # batch rows per grid block; sweepable (512/1024/2048)

COMPUTE_DTYPE = jnp.float32     # flip to jnp.bfloat16 when batched / MXU-bound


def _leaky(x, slope=0.02):
    return jnp.where(x >= 0, x, slope * x)


def _round_up(v, m):
    return -(-v // m) * m


# ---------------------------------------------------------------------------
# Kernel: the whole network is 6 matmuls on [block_b, features] activations.
# ---------------------------------------------------------------------------
def audionet_kernel(x_ref,
                    w0_ref, b0_ref, w1_ref, b1_ref,
                    w2_ref, b2_ref, w3_ref, b3_ref,
                    fw0_ref, fb0_ref, fw1_ref, fb1_ref,
                    out_ref):
    h = x_ref[...]                                    # [BB, 464], COMPUTE_DTYPE
    # conv0..conv3 (as dense matrices) + encoder_fc1[0]; each bias + LeakyReLU.
    for w_ref, b_ref in ((w0_ref, b0_ref), (w1_ref, b1_ref),
                         (w2_ref, b2_ref), (w3_ref, b3_ref),
                         (fw0_ref, fb0_ref)):
        y = jnp.dot(h, w_ref[...], preferred_element_type=jnp.float32)
        h = _leaky(y + b_ref[...]).astype(h.dtype)    # bias/act in f32, one cast
    # encoder_fc1[2]: bias, no activation; columns pre-padded to 128 lanes so the
    # store is a full, unmasked 128-lane write.
    y = jnp.dot(h, fw1_ref[...], preferred_element_type=jnp.float32)
    out_ref[...] = (y + fb1_ref[...]).astype(out_ref.dtype)


# ---------------------------------------------------------------------------
# One-time parameter re-layout (out of the per-call path).
# ---------------------------------------------------------------------------
def _conv_as_dense(w, l_in, channels_outer):
    """Dense matrix for Conv1d(k=3, stride=2, padding=1) on a flattened activation.

    w: PyTorch weight [C_out, C_in, 3].
    If channels_outer, the input flat index is ci*l_in + t (a flattened [C, T]
    activation, i.e. the network input); otherwise it is t*C_in + ci
    (position-major, the layout this function's own outputs use).
    Output flat index is always o*C_out + c (position-major).
    """
    c_out, c_in, k_sz = w.shape
    l_out = l_in // 2
    if channels_outer:
        dense = jnp.zeros((c_in, l_in, l_out * c_out), jnp.float32)
    else:
        dense = jnp.zeros((l_in, c_in, l_out * c_out), jnp.float32)
    for o in range(l_out):
        for k in range(k_sz):
            t = 2 * o - 1 + k                    # padding=1: taps at 2o-1, 2o, 2o+1
            if not (0 <= t < l_in):
                continue                         # zero padding frame contributes 0
            blk = jnp.transpose(w[:, :, k]).astype(jnp.float32)   # [C_in, C_out]
            if channels_outer:
                dense = dense.at[:, t, o * c_out:(o + 1) * c_out].set(blk)
            else:
                dense = dense.at[t, :, o * c_out:(o + 1) * c_out].set(blk)
    return dense.reshape(-1, l_out * c_out)


def prepare_params(params):
    """Fold convs into dense matrices, transpose/pad FCs.  Call once, reuse."""
    prepped = []
    length = WIN
    for i in range(4):
        w = params[f"conv{i}_w"]                          # [C_out, C_in, 3]
        b = params[f"conv{i}_b"].astype(jnp.float32)
        l_out = length // 2
        dense = _conv_as_dense(w, length, channels_outer=(i == 0))
        prepped.append(dense.astype(COMPUTE_DTYPE))
        prepped.append(jnp.tile(b, l_out)[None, :])       # bias per output position
        length = l_out
    fw0 = jnp.transpose(params["fc0_w"]).astype(COMPUTE_DTYPE)        # [64, 64]
    fb0 = params["fc0_b"].astype(jnp.float32)[None, :]
    fw1 = jnp.transpose(params["fc1_w"]).astype(jnp.float32)          # [64, dim_aud]
    fb1 = params["fc1_b"].astype(jnp.float32)
    pad = OUT_LANES - fw1.shape[1]                        # lane-dense output store
    fw1 = jnp.pad(fw1, ((0, 0), (0, pad))).astype(COMPUTE_DTYPE)      # [64, 128]
    fb1 = jnp.pad(fb1, (0, pad))[None, :]                 # [1, 128]
    prepped += [fw0, fb0, fw1, fb1]
    return tuple(prepped)


def init_params(key):
    """Deterministic synthetic parameters in PyTorch layouts."""
    conv_shapes = [(32, DIM_IN, 3), (32, 32, 3), (64, 32, 3), (64, 64, 3)]
    fc_shapes = [(64, 64), (DIM_AUD, 64)]
    params = {}
    keys = jax.random.split(key, 2 * (len(conv_shapes) + len(fc_shapes)))
    ki = 0
    for i, s in enumerate(conv_shapes):
        params[f"conv{i}_w"] = 0.1 * jax.random.normal(keys[ki], s, jnp.float32); ki += 1
        params[f"conv{i}_b"] = 0.1 * jax.random.normal(keys[ki], (s[0],), jnp.float32); ki += 1
    for i, s in enumerate(fc_shapes):
        params[f"fc{i}_w"] = 0.1 * jax.random.normal(keys[ki], s, jnp.float32); ki += 1
        params[f"fc{i}_b"] = 0.1 * jax.random.normal(keys[ki], (s[0],), jnp.float32); ki += 1
    return params


# ---------------------------------------------------------------------------
# Forward wrapper.
# ---------------------------------------------------------------------------
def audionet_forward(x_ncl, prepped, *, block_b=None):
    """x_ncl: [B, 29, T] (PyTorch NCL).  prepped: prepare_params() output.
    Returns [B, dim_aud]."""
    half_w = WIN // 2
    xw = x_ncl[:, :, 8 - half_w:8 + half_w]              # [B, 29, 16]; no-op if T == 16
    B = xw.shape[0]
    # Contiguous flatten of the window (free for a row-major array): the kernel
    # reads each sample from HBM exactly once, in its native layout.
    xw = xw.reshape(B, DIM_IN * WIN).astype(COMPUTE_DTYPE)

    sub = 16 if COMPUTE_DTYPE == jnp.bfloat16 else 8     # sublane packing
    b_sub = _round_up(B, sub)
    if block_b is None:
        if b_sub <= sub:
            block_b = b_sub
        else:
            # >= 2 blocks so dimension_semantics=("parallel",) actually spans both
            # v7x TensorCores; capped so a block always fits VMEM comfortably.
            block_b = min(MAX_BLOCK_B, _round_up(pl.cdiv(b_sub, 2), sub))
    else:
        block_b = _round_up(block_b, sub)
    b_pad = _round_up(b_sub, block_b)                    # pad so block_b divides it
    if b_pad != B:
        xw = jnp.pad(xw, ((0, b_pad - B), (0, 0)))       # zero rows, sliced off below
    grid = (b_pad // block_b,)

    def full_spec(a):
        return pl.BlockSpec(a.shape, lambda i: (0,) * a.ndim)

    in_specs = [pl.BlockSpec((block_b, DIM_IN * WIN), lambda i: (i, 0))]
    in_specs += [full_spec(a) for a in prepped]
    out_specs = pl.BlockSpec((block_b, OUT_LANES), lambda i: (i, 0))

    # Per-block VMEM: double-buffered input (464 -> 512 lanes) + double-buffered
    # 128-lane output + a few f32 intermediates; weights total ~1 MiB.
    itemsize = jnp.dtype(COMPUTE_DTYPE).itemsize
    per_row = 2 * 512 * itemsize + 2 * OUT_LANES * 4 + 6 * 512 * 4
    vmem_limit = int(min(max(block_b * per_row + (8 << 20), 20 << 20), 48 << 20))

    out = pl.pallas_call(
        audionet_kernel,
        out_shape=jax.ShapeDtypeStruct((b_pad, OUT_LANES), jnp.float32),
        grid=grid,
        in_specs=in_specs,
        out_specs=out_specs,
        compiler_params=pltpu.CompilerParams(
            dimension_semantics=("parallel",),           # batch blocks across cores
            vmem_limit_bytes=vmem_limit),
    )(xw, *prepped)
    return out[:B, :DIM_AUD]


def audionet_reference(x_ncl, params):
    """Pure-JAX reference matching the PyTorch module exactly."""
    half_w = WIN // 2
    h = x_ncl[:, :, 8 - half_w:8 + half_w].astype(jnp.float32)
    for i in range(4):
        w = params[f"conv{i}_w"]
        b = params[f"conv{i}_b"]
        h = lax.conv_general_dilated(
            h, w, window_strides=(2,), padding=((1, 1),),
            dimension_numbers=("NCH", "OIH", "NCH")) + b[None, :, None]
        h = _leaky(h)
    h = h[:, :, 0]                                        # squeeze(-1)
    h = _leaky(h @ params["fc0_w"].T + params["fc0_b"])
    h = h @ params["fc1_w"].T + params["fc1_b"]
    return h


if __name__ == "__main__":
    key = jax.random.PRNGKey(0)
    kx, kp = jax.random.split(key)
    B, T = 8, 16
    x = jax.random.normal(kx, (B, DIM_IN, T), jnp.float32)
    params = init_params(kp)

    prepped = prepare_params(params)                      # one-time weight re-layout

    fwd = jax.jit(audionet_forward)
    out = jax.block_until_ready(fwd(x, prepped))

    ref = audionet_reference(x, params)
    assert out.shape == (B, DIM_AUD), out.shape
    assert jnp.allclose(out, ref, atol=1e-4, rtol=1e-4), \
        float(jnp.max(jnp.abs(out - ref)))

    print("KERNEL_OK")
</pallas_src>

<mosaic_0001>
module attributes {stable_mosaic.version = 11 : i64} {
  func.func @audionet_kernel(%arg0: i32, %arg1: memref<8x464xf32, #tpu.memory_space<vmem>>, %arg2: memref<464x256xf32, #tpu.memory_space<vmem>>, %arg3: memref<1x256xf32, #tpu.memory_space<vmem>>, %arg4: memref<256x128xf32, #tpu.memory_space<vmem>>, %arg5: memref<1x128xf32, #tpu.memory_space<vmem>>, %arg6: memref<128x128xf32, #tpu.memory_space<vmem>>, %arg7: memref<1x128xf32, #tpu.memory_space<vmem>>, %arg8: memref<128x64xf32, #tpu.memory_space<vmem>>, %arg9: memref<1x64xf32, #tpu.memory_space<vmem>>, %arg10: memref<64x64xf32, #tpu.memory_space<vmem>>, %arg11: memref<1x64xf32, #tpu.memory_space<vmem>>, %arg12: memref<64x128xf32, #tpu.memory_space<vmem>>, %arg13: memref<1x128xf32, #tpu.memory_space<vmem>>, %arg14: memref<8x128xf32, #tpu.memory_space<vmem>>) attributes {dimension_semantics = [#tpu.dimension_semantics<parallel>], iteration_bounds = array<i64: 1>, scalar_prefetch = 0 : i64, scratch_operands = 0 : i64, tpu.core_type = #tpu.core_type<tc>, window_params = [{transform_indices = @transform_0, window_bounds = array<i64: 8, 464>}, {pipeline_mode = #tpu.pipeline_mode<synchronous>, transform_indices = @transform_1, window_bounds = array<i64: 464, 256>}, {pipeline_mode = #tpu.pipeline_mode<synchronous>, transform_indices = @transform_2, window_bounds = array<i64: 1, 256>}, {pipeline_mode = #tpu.pipeline_mode<synchronous>, transform_indices = @transform_3, window_bounds = array<i64: 256, 128>}, {pipeline_mode = #tpu.pipeline_mode<synchronous>, transform_indices = @transform_4, window_bounds = array<i64: 1, 128>}, {pipeline_mode = #tpu.pipeline_mode<synchronous>, transform_indices = @transform_5, window_bounds = array<i64: 128, 128>}, {pipeline_mode = #tpu.pipeline_mode<synchronous>, transform_indices = @transform_6, window_bounds = array<i64: 1, 128>}, {pipeline_mode = #tpu.pipeline_mode<synchronous>, transform_indices = @transform_7, window_bounds = array<i64: 128, 64>}, {pipeline_mode = #tpu.pipeline_mode<synchronous>, transform_indices = @transform_8, window_bounds = array<i64: 1, 64>}, {pipeline_mode = #tpu.pipeline_mode<synchronous>, transform_indices = @transform_9, window_bounds = array<i64: 64, 64>}, {pipeline_mode = #tpu.pipeline_mode<synchronous>, transform_indices = @transform_10, window_bounds = array<i64: 1, 64>}, {pipeline_mode = #tpu.pipeline_mode<synchronous>, transform_indices = @transform_11, window_bounds = array<i64: 64, 128>}, {pipeline_mode = #tpu.pipeline_mode<synchronous>, transform_indices = @transform_12, window_bounds = array<i64: 1, 128>}, {transform_indices = @transform_13, window_bounds = array<i64: 8, 128>}]} {
    %c0 = arith.constant 0 : index
    %c0_0 = arith.constant 0 : index
    %0 = vector.load %arg1[%c0, %c0_0] : memref<8x464xf32, #tpu.memory_space<vmem>>, vector<8x464xf32>
    %c0_1 = arith.constant 0 : index
    %c0_2 = arith.constant 0 : index
    %1 = vector.load %arg2[%c0_1, %c0_2] : memref<464x256xf32, #tpu.memory_space<vmem>>, vector<464x256xf32>
    %cst = arith.constant dense<0.000000e+00> : vector<8x256xf32>
    %2 = tpu.matmul %0, %1, %cst {dimension_numbers = #tpu.dot_dimension_numbers<[1], [0], [0], [1], [0, 0, 1, 1], [], []>} : vector<8x464xf32>, vector<464x256xf32>, vector<8x256xf32> -> vector<8x256xf32>
    %c0_3 = arith.constant 0 : index
    %c0_4 = arith.constant 0 : index
    %3 = vector.load %arg3[%c0_3, %c0_4] : memref<1x256xf32, #tpu.memory_space<vmem>>, vector<1x256xf32>
    %4 = vector.broadcast %3 : vector<1x256xf32> to vector<8x256xf32>
    %5 = arith.addf %2, %4 : vector<8x256xf32>
    %cst_5 = arith.constant 0.000000e+00 : f32
    %6 = vector.broadcast %cst_5 : f32 to vector<8x256xf32>
    %7 = arith.cmpf oge, %5, %6 : vector<8x256xf32>
    %cst_6 = arith.constant 2.000000e-02 : f32
    %8 = vector.broadcast %cst_6 : f32 to vector<8x256xf32>
    %9 = arith.mulf %8, %5 : vector<8x256xf32>
    %10 = arith.select %7, %5, %9 : vector<8x256xi1>, vector<8x256xf32>
    %c0_7 = arith.constant 0 : index
    %c0_8 = arith.constant 0 : index
    %11 = vector.load %arg4[%c0_7, %c0_8] : memref<256x128xf32, #tpu.memory_space<vmem>>, vector<256x128xf32>
    %cst_9 = arith.constant dense<0.000000e+00> : vector<8x128xf32>
    %12 = tpu.matmul %10, %11, %cst_9 {dimension_numbers = #tpu.dot_dimension_numbers<[1], [0], [0], [1], [0, 0, 1, 1], [], []>} : vector<8x256xf32>, vector<256x128xf32>, vector<8x128xf32> -> vector<8x128xf32>
    %c0_10 = arith.constant 0 : index
    %c0_11 = arith.constant 0 : index
    %13 = vector.load %arg5[%c0_10, %c0_11] : memref<1x128xf32, #tpu.memory_space<vmem>>, vector<1x128xf32>
    %14 = vector.broadcast %13 : vector<1x128xf32> to vector<8x128xf32>
    %15 = arith.addf %12, %14 : vector<8x128xf32>
    %cst_12 = arith.constant 0.000000e+00 : f32
    %16 = vector.broadcast %cst_12 : f32 to vector<8x128xf32>
    %17 = arith.cmpf oge, %15, %16 : vector<8x128xf32>
    %cst_13 = arith.constant 2.000000e-02 : f32
    %18 = vector.broadcast %cst_13 : f32 to vector<8x128xf32>
    %19 = arith.mulf %18, %15 : vector<8x128xf32>
    %20 = arith.select %17, %15, %19 : vector<8x128xi1>, vector<8x128xf32>
    %c0_14 = arith.constant 0 : index
    %c0_15 = arith.constant 0 : index
    %21 = vector.load %arg6[%c0_14, %c0_15] : memref<128x128xf32, #tpu.memory_space<vmem>>, vector<128x128xf32>
    %cst_16 = arith.constant dense<0.000000e+00> : vector<8x128xf32>
    %22 = tpu.matmul %20, %21, %cst_16 {dimension_numbers = #tpu.dot_dimension_numbers<[1], [0], [0], [1], [0, 0, 1, 1], [], []>} : vector<8x128xf32>, vector<128x128xf32>, vector<8x128xf32> -> vector<8x128xf32>
    %c0_17 = arith.constant 0 : index
    %c0_18 = arith.constant 0 : index
    %23 = vector.load %arg7[%c0_17, %c0_18] : memref<1x128xf32, #tpu.memory_space<vmem>>, vector<1x128xf32>
    %24 = vector.broadcast %23 : vector<1x128xf32> to vector<8x128xf32>
    %25 = arith.addf %22, %24 : vector<8x128xf32>
    %cst_19 = arith.constant 0.000000e+00 : f32
    %26 = vector.broadcast %cst_19 : f32 to vector<8x128xf32>
    %27 = arith.cmpf oge, %25, %26 : vector<8x128xf32>
    %cst_20 = arith.constant 2.000000e-02 : f32
    %28 = vector.broadcast %cst_20 : f32 to vector<8x128xf32>
    %29 = arith.mulf %28, %25 : vector<8x128xf32>
    %30 = arith.select %27, %25, %29 : vector<8x128xi1>, vector<8x128xf32>
    %c0_21 = arith.constant 0 : index
    %c0_22 = arith.constant 0 : index
    %31 = vector.load %arg8[%c0_21, %c0_22] : memref<128x64xf32, #tpu.memory_space<vmem>>, vector<128x64xf32>
    %cst_23 = arith.constant dense<0.000000e+00> : vector<8x64xf32>
    %32 = tpu.matmul %30, %31, %cst_23 {dimension_numbers = #tpu.dot_dimension_numbers<[1], [0], [0], [1], [0, 0, 1, 1], [], []>} : vector<8x128xf32>, vector<128x64xf32>, vector<8x64xf32> -> vector<8x64xf32>
    %c0_24 = arith.constant 0 : index
    %c0_25 = arith.constant 0 : index
    %33 = vector.load %arg9[%c0_24, %c0_25] : memref<1x64xf32, #tpu.memory_space<vmem>>, vector<1x64xf32>
    %34 = vector.broadcast %33 : vector<1x64xf32> to vector<8x64xf32>
    %35 = arith.addf %32, %34 : vector<8x64xf32>
    %cst_26 = arith.constant 0.000000e+00 : f32
    %36 = vector.broadcast %cst_26 : f32 to vector<8x64xf32>
    %37 = arith.cmpf oge, %35, %36 : vector<8x64xf32>
    %cst_27 = arith.constant 2.000000e-02 : f32
    %38 = vector.broadcast %cst_27 : f32 to vector<8x64xf32>
    %39 = arith.mulf %38, %35 : vector<8x64xf32>
    %40 = arith.select %37, %35, %39 : vector<8x64xi1>, vector<8x64xf32>
    %c0_28 = arith.constant 0 : index
    %c0_29 = arith.constant 0 : index
    %41 = vector.load %arg10[%c0_28, %c0_29] : memref<64x64xf32, #tpu.memory_space<vmem>>, vector<64x64xf32>
    %cst_30 = arith.constant dense<0.000000e+00> : vector<8x64xf32>
    %42 = tpu.matmul %40, %41, %cst_30 {dimension_numbers = #tpu.dot_dimension_numbers<[1], [0], [0], [1], [0, 0, 1, 1], [], []>} : vector<8x64xf32>, vector<64x64xf32>, vector<8x64xf32> -> vector<8x64xf32>
    %c0_31 = arith.constant 0 : index
    %c0_32 = arith.constant 0 : index
    %43 = vector.load %arg11[%c0_31, %c0_32] : memref<1x64xf32, #tpu.memory_space<vmem>>, vector<1x64xf32>
    %44 = vector.broadcast %43 : vector<1x64xf32> to vector<8x64xf32>
    %45 = arith.addf %42, %44 : vector<8x64xf32>
    %cst_33 = arith.constant 0.000000e+00 : f32
    %46 = vector.broadcast %cst_33 : f32 to vector<8x64xf32>
    %47 = arith.cmpf oge, %45, %46 : vector<8x64xf32>
    %cst_34 = arith.constant 2.000000e-02 : f32
    %48 = vector.broadcast %cst_34 : f32 to vector<8x64xf32>
    %49 = arith.mulf %48, %45 : vector<8x64xf32>
    %50 = arith.select %47, %45, %49 : vector<8x64xi1>, vector<8x64xf32>
    %c0_35 = arith.constant 0 : index
    %c0_36 = arith.constant 0 : index
    %51 = vector.load %arg12[%c0_35, %c0_36] : memref<64x128xf32, #tpu.memory_space<vmem>>, vector<64x128xf32>
    %cst_37 = arith.constant dense<0.000000e+00> : vector<8x128xf32>
    %52 = tpu.matmul %50, %51, %cst_37 {dimension_numbers = #tpu.dot_dimension_numbers<[1], [0], [0], [1], [0, 0, 1, 1], [], []>} : vector<8x64xf32>, vector<64x128xf32>, vector<8x128xf32> -> vector<8x128xf32>
    %c0_38 = arith.constant 0 : index
    %c0_39 = arith.constant 0 : index
    %53 = vector.load %arg13[%c0_38, %c0_39] : memref<1x128xf32, #tpu.memory_space<vmem>>, vector<1x128xf32>
    %54 = vector.broadcast %53 : vector<1x128xf32> to vector<8x128xf32>
    %55 = arith.addf %52, %54 : vector<8x128xf32>
    %c0_40 = arith.constant 0 : index
    %c0_41 = arith.constant 0 : index
    %56 = vector.load %arg14[%c0_40, %c0_41] : memref<8x128xf32, #tpu.memory_space<vmem>>, vector<8x128xf32>
    tpu.vector_store %arg14[%c0_40, %c0_41], %55 {strides = array<i32>} : memref<8x128xf32, #tpu.memory_space<vmem>>, vector<8x128xf32>,
    return
  }
  func.func @transform_0(%arg0: i32) -> (i32, i32) {
    %c0_i32 = arith.constant 0 : i32
    %c0_i32_0 = arith.constant 0 : i32
    return %arg0, %c0_i32 : i32, i32
  }
  func.func @transform_1(%arg0: i32) -> (i32, i32) {
    %c0_i32 = arith.constant 0 : i32
    %c0_i32_0 = arith.constant 0 : i32
    %c0_i32_1 = arith.constant 0 : i32
    return %c0_i32, %c0_i32_0 : i32, i32
  }
  func.func @transform_2(%arg0: i32) -> (i32, i32) {
    %c0_i32 = arith.constant 0 : i32
    %c0_i32_0 = arith.constant 0 : i32
    %c0_i32_1 = arith.constant 0 : i32
    return %c0_i32, %c0_i32_0 : i32, i32
  }
  func.func @transform_3(%arg0: i32) -> (i32, i32) {
    %c0_i32 = arith.constant 0 : i32
    %c0_i32_0 = arith.constant 0 : i32
    %c0_i32_1 = arith.constant 0 : i32
    return %c0_i32, %c0_i32_0 : i32, i32
  }
  func.func @transform_4(%arg0: i32) -> (i32, i32) {
    %c0_i32 = arith.constant 0 : i32
    %c0_i32_0 = arith.constant 0 : i32
    %c0_i32_1 = arith.constant 0 : i32
    return %c0_i32, %c0_i32_0 : i32, i32
  }
  func.func @transform_5(%arg0: i32) -> (i32, i32) {
    %c0_i32 = arith.constant 0 : i32
    %c0_i32_0 = arith.constant 0 : i32
    %c0_i32_1 = arith.constant 0 : i32
    return %c0_i32, %c0_i32_0 : i32, i32
  }
  func.func @transform_6(%arg0: i32) -> (i32, i32) {
    %c0_i32 = arith.constant 0 : i32
    %c0_i32_0 = arith.constant 0 : i32
    %c0_i32_1 = arith.constant 0 : i32
    return %c0_i32, %c0_i32_0 : i32, i32
  }
  func.func @transform_7(%arg0: i32) -> (i32, i32) {
    %c0_i32 = arith.constant 0 : i32
    %c0_i32_0 = arith.constant 0 : i32
    %c0_i32_1 = arith.constant 0 : i32
    return %c0_i32, %c0_i32_0 : i32, i32
  }
  func.func @transform_8(%arg0: i32) -> (i32, i32) {
    %c0_i32 = arith.constant 0 : i32
    %c0_i32_0 = arith.constant 0 : i32
    %c0_i32_1 = arith.constant 0 : i32
    return %c0_i32, %c0_i32_0 : i32, i32
  }
  func.func @transform_9(%arg0: i32) -> (i32, i32) {
    %c0_i32 = arith.constant 0 : i32
    %c0_i32_0 = arith.constant 0 : i32
    %c0_i32_1 = arith.constant 0 : i32
    return %c0_i32, %c0_i32_0 : i32, i32
  }
  func.func @transform_10(%arg0: i32) -> (i32, i32) {
    %c0_i32 = arith.constant 0 : i32
    %c0_i32_0 = arith.constant 0 : i32
    %c0_i32_1 = arith.constant 0 : i32
    return %c0_i32, %c0_i32_0 : i32, i32
  }
  func.func @transform_11(%arg0: i32) -> (i32, i32) {
    %c0_i32 = arith.constant 0 : i32
    %c0_i32_0 = arith.constant 0 : i32
    %c0_i32_1 = arith.constant 0 : i32
    return %c0_i32, %c0_i32_0 : i32, i32
  }
  func.func @transform_12(%arg0: i32) -> (i32, i32) {
    %c0_i32 = arith.constant 0 : i32
    %c0_i32_0 = arith.constant 0 : i32
    %c0_i32_1 = arith.constant 0 : i32
    return %c0_i32, %c0_i32_0 : i32, i32
  }
  func.func @transform_13(%arg0: i32) -> (i32, i32) {
    %c0_i32 = arith.constant 0 : i32
    %c0_i32_0 = arith.constant 0 : i32
    return %arg0, %c0_i32 : i32, i32
  }
}

</mosaic_0001>

<bundles_post_ra>
// kernel: audionet_forward.1
= control target key start
LH: loop header
LB: loop body
LE: loop exit
PB: predicated region body
PF: predicated region fallthrough
CT: control target
= control target key end

     0   :  { %18 = vsyncpa [#allocation3], 0  ;;  %s1506_s0 = inlined_call_operand.vmem [shape: f32[8,464], index: 0, kind: input, shape index: {}]   ;;  %s1507_s1 = inlined_call_operand.hbm [shape: f32[464,256], index: 1, kind: input, shape index: {}]   ;;  %s1508_s2 = inlined_call_operand.vmem [shape: f32[1,256], index: 2, kind: input, shape index: {}]   ;;  %s1509_s3 = inlined_call_operand.vmem [shape: f32[256,128], index: 3, kind: input, shape index: {}]   ;;  %s1510_s4 = inlined_call_operand.vmem [shape: f32[1,128], index: 4, kind: input, shape index: {}]   ;;  %s1511_s5 = inlined_call_operand.vmem [shape: f32[128,128], index: 5, kind: input, shape index: {}]   ;;  %s1512_s6 = inlined_call_operand.vmem [shape: f32[1,128], index: 6, kind: input, shape index: {}]   ;;  %s1513_s7 = inlined_call_operand.vmem [shape: f32[128,64], index: 7, kind: input, shape index: {}]   ;;  %s1514_s8 = inlined_call_operand.vmem [shape: f32[1,64], index: 8, kind: input, shape index: {}]   ;;  %s1515_s9 = inlined_call_operand.vmem [shape: f32[64,64], index: 9, kind: input, shape index: {}]   ;;  %s1516_s10 = inlined_call_operand.vmem [shape: f32[1,64], index: 10, kind: input, shape index: {}]   ;;  %s1517_s11 = inlined_call_operand.vmem [shape: f32[64,128], index: 11, kind: input, shape index: {}]   ;;  %s1518_s12 = inlined_call_operand.vmem [shape: f32[1,128], index: 12, kind: input, shape index: {}]   ;;  %s1519_s13 = inlined_call_operand.hbm [shape: f32[8,128], index: 13, kind: output, shape index: {}]  }
   0x1   :  { %19 = vsyncpa [#allocation4], 0  ;;  %s1096_s25 = smov [#allocation2]  }
   0x2   :  { %s27_s26 = sshll.u32 %s1096_s25, 4  ;;  %s28_s26 = int_to_ptr.vmem [resolvable:$true] %s27_s26 }
   0x3   :  { %s1060_s27 = scalar_lea.vmem %s28_s26, 14848  ;;  %p1065_p1 = scmp.lt.s32.totalorder %s28_s26, %s28_s26 }
   0x4   :  { %p1061_p0 = scmp.ne.s32.totalorder %s28_s26, %s1060_s27  ;;  %p1066_p2 = scmp.lt.s32.totalorder %s1060_s27, %s1060_s27 }
   0x6   :  { %p1067_p3 = por %p1066_p2, %p1065_p1 }
   0x8   :  { %p1068_p4 = pnand %p1067_p3, %p1061_p0 }
   0xa   :  { %1071 = shalt.err (!%p1068_p4)
}
   0xb   :  { %s1097_s28 = smov 256   ;;  %s1098_s29 = smov 16  }
   0xc   :  { %33 = dma.hbm_to_vmem [thread:$0]  %s1507_s1, 14848, %s28_s26, [#allocation3], %s1097_s28, %s1097_s28, %s1098_s29  }
   0xd   :  { %1092 = dma.done.wait [#allocation3], 14848  }
   0xe   :  { %1093 = vsyncadd [#allocation3], 4294952448  ;;  %v94_v0 = vld [vmem:[#allocation2 + $0xf8] sm:$0xff]  ;;  %v93_v1 = vld [vmem:[#allocation2 + $0xf0] sm:$0xff]  ;;  %vm191_vm0 = vcmask 654336   ;;  %vm1100_vm3 = vmmov 0  }
   0xf   :  { %v92_v2 = vld [vmem:[#allocation2 + $0xe8] sm:$0xff]  ;;  %195 = vmatprep.subr.mxu0 %v94_v0  ;;  %v91_v3 = vld [vmem:[#allocation2 + $0xe0] sm:$0xff]  ;;  %v90_v4 = vld [vmem:[#allocation2 + $0xd8] sm:$0xff]  ;;  %vm662_vm7 = vcmask 523264   ;;  %s1101_s23 = smov [#allocation5]  }
  0x10   :  { %196 = vmatpush1.msra.mxu0 %v93_v1  ;;  %v89_v5 = vld [vmem:[#allocation2 + $0xd0] sm:$0xff]  ;;  %v88_v6 = vld [vmem:[#allocation2 + $0xc8] sm:$0xff]  ;;  %v158_v7 = vld [vmem:[#allocation2 + $0x2f8] sm:$0xff]  ;;  %s834_s24 = sshll.u32 %s1101_s23, 4  ;;  %s835_s24 = int_to_ptr.vmem [resolvable:$true] %s834_s24 }
  0x11   :  { %197 = vmatprep.subr.mxu0 %v92_v2  ;;  %v87_v8 = vld [vmem:[#allocation2 + $0xc0] sm:$0xff]  ;;  %266 = vmatprep.subr.mxu1 %v158_v7  ;;  %v157_v9 = vld [vmem:[#allocation2 + $0x2f0] sm:$0xff]  ;;  %v156_v10 = vld [vmem:[#allocation2 + $0x2e8] sm:$0xff]  ;;  %p1077_p6 = scmp.lt.s32.totalorder %s835_s24, %s835_s24 }
  0x12   :  { %198 = vmatpush1.msra.mxu0 %v91_v3  ;;  %v86_v11 = vld [vmem:[#allocation2 + $0xb8] sm:$0xff]  ;;  %267 = vmatpush1.msra.mxu1 %v157_v9  ;;  %v155_v12 = vld [vmem:[#allocation2 + $0x2e0] sm:$0xff]  ;;  %v85_v13 = vld [vmem:[#allocation2 + $0xb0] sm:$0xff] }
  0x13   :  { %199 = vmatprep.subr.mxu0 %v90_v4  ;;  %268 = vmatprep.subr.mxu1 %v156_v10  ;;  %v154_v14 = vld [vmem:[#allocation2 + $0x2d8] sm:$0xff]  ;;  %v153_v15 = vld [vmem:[#allocation2 + $0x2d0] sm:$0xff]  ;;  %v84_v16 = vld [vmem:[#allocation2 + $0xa8] sm:$0xff] }
  0x14   :  { %200 = vmatpush1.msra.mxu0 %v89_v5  ;;  %269 = vmatpush1.msra.mxu1 %v155_v12  ;;  %v152_v17 = vld [vmem:[#allocation2 + $0x2c8] sm:$0xff]  ;;  %v83_v18 = vld [vmem:[#allocation2 + $0xa0] sm:$0xff]  ;;  %v82_v20 = vld [vmem:[#allocation2 + $0x98] sm:$0xff] }
  0x15   :  { %201 = vmatprep.subr.mxu0 %v88_v6  ;;  %270 = vmatprep.subr.mxu1 %v154_v14  ;;  %v151_v19 = vld [vmem:[#allocation2 + $0x2c0] sm:$0xff]  ;;  %v150_v21 = vld [vmem:[#allocation2 + $0x2b8] sm:$0xff]  ;;  %v81_v22 = vld [vmem:[#allocation2 + $0x90] sm:$0xff] }
  0x16   :  { %202 = vmatpush1.msra.mxu0 %v87_v8  ;;  %271 = vmatpush1.msra.mxu1 %v153_v15  ;;  %v149_v23 = vld [vmem:[#allocation2 + $0x2b0] sm:$0xff]  ;;  %v80_v24 = vld [vmem:[#allocation2 + $0x88] sm:$0xff]  ;;  %v79_v26 = vld [vmem:[#allocation2 + $0x80] sm:$0xff] }
  0x17   :  { %203 = vmatprep.subr.mxu0 %v86_v11  ;;  %272 = vmatprep.subr.mxu1 %v152_v17  ;;  %v148_v25 = vld [vmem:[#allocation2 + $0x2a8] sm:$0xff]  ;;  %v147_v27 = vld [vmem:[#allocation2 + $0x2a0] sm:$0xff]  ;;  %v78_v28 = vld [vmem:[#allocation2 + $0x78] sm:$0xff] }
  0x18   :  { %204 = vmatpush1.msra.mxu0 %v85_v13  ;;  %273 = vmatpush1.msra.mxu1 %v151_v19  ;;  %v146_v29 = vld [vmem:[#allocation2 + $0x298] sm:$0xff]  ;;  %v77_v30 = vld [vmem:[#allocation2 + $0x70] sm:$0xff]  ;;  %v76_v32 = vld [vmem:[#allocation2 + $0x68] sm:$0xff] }
  0x19   :  { %205 = vmatprep.subr.mxu0 %v84_v16  ;;  %274 = vmatprep.subr.mxu1 %v150_v21  ;;  %v145_v31 = vld [vmem:[#allocation2 + $0x290] sm:$0xff]  ;;  %v144_v33 = vld [vmem:[#allocation2 + $0x288] sm:$0xff]  ;;  %v75_v34 = vld [vmem:[#allocation2 + $0x60] sm:$0xff] }
  0x1a   :  { %206 = vmatpush1.msra.mxu0 %v83_v18  ;;  %275 = vmatpush1.msra.mxu1 %v149_v23  ;;  %v143_v35 = vld [vmem:[#allocation2 + $0x280] sm:$0xff]  ;;  %v74_v36 = vld [vmem:[#allocation2 + $0x58] sm:$0xff]  ;;  %v73_v38 = vld [vmem:[#allocation2 + $0x50] sm:$0xff] }
  0x1b   :  { %207 = vmatprep.subr.mxu0 %v82_v20  ;;  %276 = vmatprep.subr.mxu1 %v148_v25  ;;  %v142_v37 = vld [vmem:[#allocation2 + $0x278] sm:$0xff]  ;;  %v141_v39 = vld [vmem:[#allocation2 + $0x270] sm:$0xff]  ;;  %v72_v40 = vld [vmem:[#allocation2 + $0x48] sm:$0xff] }
  0x1c   :  { %208 = vmatpush1.msra.mxu0 %v81_v22  ;;  %277 = vmatpush1.msra.mxu1 %v147_v27  ;;  %v140_v41 = vld [vmem:[#allocation2 + $0x268] sm:$0xff]  ;;  %v71_v42 = vld [vmem:[#allocation2 + $0x40] sm:$0xff]  ;;  %v70_v44 = vld [vmem:[#allocation2 + $0x38] sm:$0xff] }
  0x1d   :  { %209 = vmatprep.subr.mxu0 %v80_v24  ;;  %278 = vmatprep.subr.mxu1 %v146_v29  ;;  %v139_v43 = vld [vmem:[#allocation2 + $0x260] sm:$0xff]  ;;  %v138_v45 = vld [vmem:[#allocation2 + $0x258] sm:$0xff]  ;;  %v69_v46 = vld [vmem:[#allocation2 + $0x30] sm:$0xff] }
  0x1e   :  { %210 = vmatpush1.msra.mxu0 %v79_v26  ;;  %279 = vmatpush1.msra.mxu1 %v145_v31  ;;  %v137_v47 = vld [vmem:[#allocation2 + $0x250] sm:$0xff]  ;;  %v68_v48 = vld [vmem:[#allocation2 + $0x28] sm:$0xff]  ;;  %v67_v50 = vld [vmem:[#allocation2 + $0x20] sm:$0xff] }
  0x1f   :  { %211 = vmatprep.subr.mxu0 %v78_v28  ;;  %280 = vmatprep.subr.mxu1 %v144_v33  ;;  %v136_v49 = vld [vmem:[#allocation2 + $0x248] sm:$0xff]  ;;  %v135_v51 = vld [vmem:[#allocation2 + $0x240] sm:$0xff]  ;;  %v66_v52 = vld [vmem:[#allocation2 + $0x18] sm:$0xff] }
  0x20   :  { %212 = vmatpush1.msra.mxu0 %v77_v30  ;;  %281 = vmatpush1.msra.mxu1 %v143_v35  ;;  %v134_v53 = vld [vmem:[#allocation2 + $0x238] sm:$0xff]  ;;  %v65_v54 = vld [vmem:[#allocation2 + $0x10] sm:$0xff]  ;;  %v64_v56 = vld [vmem:[#allocation2 + $0x8] sm:$0xff] }
  0x21   :  { %213 = vmatprep.subr.mxu0 %v76_v32  ;;  %282 = vmatprep.subr.mxu1 %v142_v37  ;;  %v133_v55 = vld [vmem:[#allocation2 + $0x230] sm:$0xff]  ;;  %v132_v57 = vld [vmem:[#allocation2 + $0x228] sm:$0xff]  ;;  %v63_v58 = vld [vmem:[#allocation2] sm:$0xff] }
  0x22   :  { %214 = vmatpush1.msra.mxu0 %v75_v34  ;;  %283 = vmatpush1.msra.mxu1 %v141_v39  ;;  %v131_v59 = vld [vmem:[#allocation2 + $0x220] sm:$0xff]  ;;  %v126_v60 = vld [vmem:[#allocation2 + $0x1f8] sm:$0xff]  ;;  %v125_v62 = vld [vmem:[#allocation2 + $0x1f0] sm:$0xff] }
  0x23   :  { %215 = vmatprep.subr.mxu0 %v74_v36  ;;  %284 = vmatprep.subr.mxu1 %v140_v41  ;;  %v130_v61 = vld [vmem:[#allocation2 + $0x218] sm:$0xff]  ;;  %v129_v63 = vld [vmem:[#allocation2 + $0x210] sm:$0xff]  ;;  %v124_v0 = vld [vmem:[#allocation2 + $0x1e8] sm:$0xff] }
  0x24   :  { %216 = vmatpush1.msra.mxu0 %v73_v38  ;;  %285 = vmatpush1.msra.mxu1 %v139_v43  ;;  %v128_v1 = vld [vmem:[#allocation2 + $0x208] sm:$0xff]  ;;  %v123_v2 = vld [vmem:[#allocation2 + $0x1e0] sm:$0xff]  ;;  %v122_v4 = vld [vmem:[#allocation2 + $0x1d8] sm:$0xff] }
  0x25   :  { %217 = vmatprep.subr.mxu0 %v72_v40  ;;  %286 = vmatprep.subr.mxu1 %v138_v45  ;;  %v127_v3 = vld [vmem:[#allocation2 + $0x200] sm:$0xff]  ;;  %v178_v5 = vld [vmem:[#allocation2 + $0x398] sm:$0xff]  ;;  %v121_v6 = vld [vmem:[#allocation2 + $0x1d0] sm:$0xff] }
  0x26   :  { %218 = vmatpush1.msra.mxu0 %v71_v42  ;;  %287 = vmatpush1.msra.mxu1 %v137_v47  ;;  %v177_v7 = vld [vmem:[#allocation2 + $0x390] sm:$0xff]  ;;  %v120_v8 = vld [vmem:[#allocation2 + $0x1c8] sm:$0xff]  ;;  %v119_v10 = vld [vmem:[#allocation2 + $0x1c0] sm:$0xff] }
  0x27   :  { %219 = vmatprep.subr.mxu0 %v70_v44  ;;  %288 = vmatprep.subr.mxu1 %v136_v49  ;;  %v176_v9 = vld [vmem:[#allocation2 + $0x388] sm:$0xff]  ;;  %v175_v11 = vld [vmem:[#allocation2 + $0x380] sm:$0xff]  ;;  %v118_v12 = vld [vmem:[#allocation2 + $0x1b8] sm:$0xff] }
  0x28   :  { %220 = vmatpush1.msra.mxu0 %v69_v46  ;;  %289 = vmatpush1.msra.mxu1 %v135_v51  ;;  %v174_v13 = vld [vmem:[#allocation2 + $0x378] sm:$0xff]  ;;  %v117_v14 = vld [vmem:[#allocation2 + $0x1b0] sm:$0xff]  ;;  %v116_v16 = vld [vmem:[#allocation2 + $0x1a8] sm:$0xff] }
  0x29   :  { %221 = vmatprep.subr.mxu0 %v68_v48  ;;  %290 = vmatprep.subr.mxu1 %v134_v53  ;;  %v173_v15 = vld [vmem:[#allocation2 + $0x370] sm:$0xff]  ;;  %v172_v17 = vld [vmem:[#allocation2 + $0x368] sm:$0xff]  ;;  %v115_v18 = vld [vmem:[#allocation2 + $0x1a0] sm:$0xff] }
  0x2a   :  { %222 = vmatpush1.msra.mxu0 %v67_v50  ;;  %291 = vmatpush1.msra.mxu1 %v133_v55  ;;  %v171_v19 = vld [vmem:[#allocation2 + $0x360] sm:$0xff]  ;;  %v114_v20 = vld [vmem:[#allocation2 + $0x198] sm:$0xff]  ;;  %v113_v22 = vld [vmem:[#allocation2 + $0x190] sm:$0xff] }
  0x2b   :  { %223 = vmatprep.subr.mxu0 %v66_v52  ;;  %292 = vmatprep.subr.mxu1 %v132_v57  ;;  %v170_v21 = vld [vmem:[#allocation2 + $0x358] sm:$0xff]  ;;  %v169_v23 = vld [vmem:[#allocation2 + $0x350] sm:$0xff]  ;;  %v112_v24 = vld [vmem:[#allocation2 + $0x188] sm:$0xff] }
  0x2c   :  { %224 = vmatpush1.msra.mxu0 %v65_v54  ;;  %293 = vmatpush1.msra.mxu1 %v131_v59  ;;  %v168_v25 = vld [vmem:[#allocation2 + $0x348] sm:$0xff]  ;;  %v111_v26 = vld [vmem:[#allocation2 + $0x180] sm:$0xff]  ;;  %v110_v28 = vld [vmem:[#allocation2 + $0x178] sm:$0xff] }
  0x2d   :  { %225 = vmatprep.subr.mxu0 %v64_v56  ;;  %294 = vmatprep.subr.mxu1 %v130_v61  ;;  %v167_v27 = vld [vmem:[#allocation2 + $0x340] sm:$0xff]  ;;  %v166_v29 = vld [vmem:[#allocation2 + $0x338] sm:$0xff]  ;;  %v109_v30 = vld [vmem:[#allocation2 + $0x170] sm:$0xff] }
  0x2e   :  { %226 = vmatpush1.msra.mxu0 %v63_v58  ;;  %295 = vmatpush1.msra.mxu1 %v129_v63  ;;  %v165_v31 = vld [vmem:[#allocation2 + $0x330] sm:$0xff]  ;;  %v108_v32 = vld [vmem:[#allocation2 + $0x168] sm:$0xff]  ;;  %v107_v34 = vld [vmem:[#allocation2 + $0x160] sm:$0xff] }
  0x2f   :  { %227 = vmatprep.subr.mxu0 %v126_v60  ;;  %296 = vmatprep.subr.mxu1 %v128_v1  ;;  %v164_v33 = vld [vmem:[#allocation2 + $0x328] sm:$0xff]  ;;  %v163_v35 = vld [vmem:[#allocation2 + $0x320] sm:$0xff]  ;;  %v106_v36 = vld [vmem:[#allocation2 + $0x158] sm:$0xff] }
  0x30   :  { %228 = vmatpush2.msra.mxu0 %v125_v62  ;;  %297 = vmatpush1.msra.mxu1 %v127_v3  ;;  %v162_v37 = vld [vmem:[#allocation2 + $0x318] sm:$0xff]  ;;  %v105_v38 = vld [vmem:[#allocation2 + $0x150] sm:$0xff]  ;;  %v104_v40 = vld [vmem:[#allocation2 + $0x148] sm:$0xff] }
  0x31   :  { %229 = vmatprep.subr.mxu0 %v124_v0  ;;  %310 = vmatprep.subr.mxu1 %v178_v5  ;;  %v161_v39 = vld [vmem:[#allocation2 + $0x310] sm:$0xff]  ;;  %v160_v41 = vld [vmem:[#allocation2 + $0x308] sm:$0xff]  ;;  %v103_v42 = vld [vmem:[#allocation2 + $0x140] sm:$0xff] }
  0x32   :  { %230 = vmatpush2.msra.mxu0 %v123_v2  ;;  %311 = vmatpush2.msra.mxu1 %v177_v7  ;;  %v60_v43 = vld [vmem:[%s1506_s0 + $0x8] sm:$0xff]  ;;  %v102_v44 = vld [vmem:[#allocation2 + $0x138] sm:$0xff]  ;;  %v159_v45 = vld [vmem:[#allocation2 + $0x300] sm:$0xff] }
  0x33   :  { %231 = vmatprep.subr.mxu0 %v122_v4  ;;  %312 = vmatprep.subr.mxu1 %v176_v9  ;;  %v101_v46 = vld [vmem:[#allocation2 + $0x130] sm:$0xff]  ;;  %v62_v47 = vld [vmem:[%s1506_s0 + $0x18] sm:$0xff]  ;;  %v100_v48 = vld [vmem:[#allocation2 + $0x128] sm:$0xff] }
  0x34   :  { %232 = vmatpush2.msra.mxu0 %v121_v6  ;;  %313 = vmatpush2.msra.mxu1 %v175_v11  ;;  %v61_v49 = vld [vmem:[%s1506_s0 + $0x10] sm:$0xff]  ;;  %v99_v50 = vld [vmem:[#allocation2 + $0x120] sm:$0xff]  ;;  %v374_v51 = vld [vmem:[%s1509_s3 + $0xf8] sm:$0xff] }
  0x35   :  { %233 = vmatprep.subr.mxu0 %v120_v8  ;;  %314 = vmatprep.subr.mxu1 %v174_v13  ;;  %v98_v52 = vld [vmem:[#allocation2 + $0x118] sm:$0xff]  ;;  %v97_v54 = vld [vmem:[#allocation2 + $0x110] sm:$0xff]  ;;  %v96_v56 = vld [vmem:[#allocation2 + $0x108] sm:$0xff] }
  0x36   :  { %234 = vmatpush2.msra.mxu0 %v119_v10  ;;  %315 = vmatpush2.msra.mxu1 %v173_v15  ;;  %v358_v53 = vld [vmem:[%s1509_s3 + $0x78] sm:$0xff]  ;;  %v373_v55 = vld [vmem:[%s1509_s3 + $0xf0] sm:$0xff]  ;;  %v95_v58 = vld [vmem:[#allocation2 + $0x100] sm:$0xff] }
  0x37   :  { %235 = vmatprep.subr.mxu0 %v118_v12  ;;  %316 = vmatprep.subr.mxu1 %v172_v17  ;;  %v357_v57 = vld [vmem:[%s1509_s3 + $0x70] sm:$0xff]  ;;  %v372_v59 = vld [vmem:[%s1509_s3 + $0xe8] sm:$0xff]  ;;  %v59_v60 = vld [vmem:[%s1506_s0] sm:$0xff] }
  0x38   :  { %236 = vmatpush2.msra.mxu0 %v117_v14  ;;  %317 = vmatpush2.msra.mxu1 %v171_v19  ;;  %v356_v61 = vld [vmem:[%s1509_s3 + $0x68] sm:$0xff]  ;;  %v371_v62 = vld [vmem:[%s1509_s3 + $0xe0] sm:$0xff]  ;;  %v370_v0 = vld [vmem:[%s1509_s3 + $0xd8] sm:$0xff] }
  0x39   :  { %237 = vmatprep.subr.mxu0 %v116_v16  ;;  %318 = vmatprep.subr.mxu1 %v170_v21  ;;  %v355_v63 = vld [vmem:[%s1509_s3 + $0x60] sm:$0xff]  ;;  %v354_v1 = vld [vmem:[%s1509_s3 + $0x58] sm:$0xff]  ;;  %v369_v2 = vld [vmem:[%s1509_s3 + $0xd0] sm:$0xff] }
  0x3a   :  { %238 = vmatpush2.msra.mxu0 %v115_v18  ;;  %319 = vmatpush2.msra.mxu1 %v169_v23  ;;  %v353_v3 = vld [vmem:[%s1509_s3 + $0x50] sm:$0xff]  ;;  %v368_v4 = vld [vmem:[%s1509_s3 + $0xc8] sm:$0xff]  ;;  %v367_v6 = vld [vmem:[%s1509_s3 + $0xc0] sm:$0xff] }
  0x3b   :  { %239 = vmatprep.subr.mxu0 %v114_v20  ;;  %320 = vmatprep.subr.mxu1 %v168_v25  ;;  %v352_v5 = vld [vmem:[%s1509_s3 + $0x48] sm:$0xff]  ;;  %v351_v7 = vld [vmem:[%s1509_s3 + $0x40] sm:$0xff]  ;;  %v366_v8 = vld [vmem:[%s1509_s3 + $0xb8] sm:$0xff]  ;;  %v1099_v25 = vmov 0.0  }
  0x3c   :  { %240 = vmatpush2.msra.mxu0 %v113_v22  ;;  %321 = vmatpush2.msra.mxu1 %v167_v27  ;;  %v350_v9 = vld [vmem:[%s1509_s3 + $0x38] sm:$0xff]  ;;  %v365_v10 = vld [vmem:[%s1509_s3 + $0xb0] sm:$0xff]  ;;  %v364_v12 = vld [vmem:[%s1509_s3 + $0xa8] sm:$0xff] }
  0x3d   :  { %241 = vmatprep.subr.mxu0 %v112_v24  ;;  %322 = vmatprep.subr.mxu1 %v166_v29  ;;  %v349_v11 = vld [vmem:[%s1509_s3 + $0x30] sm:$0xff]  ;;  %v348_v13 = vld [vmem:[%s1509_s3 + $0x28] sm:$0xff]  ;;  %v363_v14 = vld [vmem:[%s1509_s3 + $0xa0] sm:$0xff] }
  0x3e   :  { %242 = vmatpush2.msra.mxu0 %v111_v26  ;;  %323 = vmatpush2.msra.mxu1 %v165_v31  ;;  %v347_v15 = vld [vmem:[%s1509_s3 + $0x20] sm:$0xff]  ;;  %v362_v16 = vld [vmem:[%s1509_s3 + $0x98] sm:$0xff]  ;;  %v361_v18 = vld [vmem:[%s1509_s3 + $0x90] sm:$0xff] }
  0x3f   :  { %243 = vmatprep.subr.mxu0 %v110_v28  ;;  %324 = vmatprep.subr.mxu1 %v164_v33  ;;  %v346_v17 = vld [vmem:[%s1509_s3 + $0x18] sm:$0xff]  ;;  %v345_v19 = vld [vmem:[%s1509_s3 + $0x10] sm:$0xff]  ;;  %v360_v20 = vld [vmem:[%s1509_s3 + $0x88] sm:$0xff] }
  0x40   :  { %244 = vmatpush2.msra.mxu0 %v109_v30  ;;  %325 = vmatpush2.msra.mxu1 %v163_v35  ;;  %v344_v21 = vld [vmem:[%s1509_s3 + $0x8] sm:$0xff]  ;;  %v359_v22 = vld [vmem:[%s1509_s3 + $0x80] sm:$0xff]  ;;  %v470_v24 = vld [vmem:[%s1511_s5 + $0x78] sm:$0xff] }
  0x41   :  { %245 = vmatprep.subr.mxu0 %v108_v32  ;;  %326 = vmatprep.subr.mxu1 %v162_v37  ;;  %v343_v23 = vld [vmem:[%s1509_s3] sm:$0xff]  ;;  %v469_v26 = vld [vmem:[%s1511_s5 + $0x70] sm:$0xff]  ;;  %v468_v27 = vld [vmem:[%s1511_s5 + $0x68] sm:$0xff] }
  0x42   :  { %246 = vmatpush2.msra.mxu0 %v107_v34  ;;  %327 = vmatpush2.msra.mxu1 %v161_v39  ;;  %v467_v28 = vld [vmem:[%s1511_s5 + $0x60] sm:$0xff]  ;;  %v466_v29 = vld [vmem:[%s1511_s5 + $0x58] sm:$0xff]  ;;  %v465_v30 = vld [vmem:[%s1511_s5 + $0x50] sm:$0xff] }
  0x43   :  { %247 = vmatprep.subr.mxu0 %v106_v36  ;;  %328 = vmatprep.subr.mxu1 %v160_v41  ;;  %v464_v31 = vld [vmem:[%s1511_s5 + $0x48] sm:$0xff]  ;;  %v463_v32 = vld [vmem:[%s1511_s5 + $0x40] sm:$0xff]  ;;  %v462_v33 = vld [vmem:[%s1511_s5 + $0x38] sm:$0xff]  ;;  %v181_v36 = vlaneseq }
  0x44   :  { %248 = vmatpush2.msra.mxu0 %v105_v38  ;;  %259 = vmatprep.mubr.f32.mxu0 %v60_v43  ;;  %v461_v34 = vld [vmem:[%s1511_s5 + $0x30] sm:$0xff]  ;;  %v460_v35 = vld [vmem:[%s1511_s5 + $0x28] sm:$0xff]  ;;  %v179_v39 = vld [vmem:[%s1508_s2] sm:$0x3] }
  0x45   :  { %249 = vmatprep.subr.mxu0 %v104_v40  ;;  %329 = vmatpush2.msra.mxu1 %v159_v45  ;;  %v182_v37 = vshrl.u32 %v181_v36, 7 }
  0x46   :  { %250 = vmatpush2.msra.mxu0 %v103_v42  ;;  %843 = vmatprep.mubr.msk.f32.mxu1 %vm191_vm0, %v62_v47 }
  0x47   :  { %251 = vmatprep.subr.mxu0 %v102_v44  ;;  %331 = vmatmul.mubr.f32.vlgmr.msra.gmra.mxu1 %v61_v49  ;;  %v183_v38 = vsub.s32 0, %v182_v37  ;;  %v187_v40 = vsub.s32 1, %v182_v37 }
  0x48   :  { %252 = vmatpush2.msra.mxu0 %v101_v46  ;;  %851 = vmatprep.subr.mxu1 %v374_v51 }
  0x49   :  { %253 = vmatprep.subr.mxu0 %v100_v48  ;;  %852 = vmatpush3.msra.mxu1 %v358_v53  ;;  %v184_v41 = vrot.slane %v179_v39, %v183_v38  ;;  %v188_v42 = vrot.slane %v179_v39, %v187_v40  ;;  %v746_v39 = vld [vmem:[%s1517_s11 + $0x38] sm:$0xff] }
  0x4a   :  { %254 = vmatpush2.msra.mxu0 %v99_v50  ;;  %853 = vmatprep.subr.mxu1 %v373_v55  ;;  %v459_v55 = vld [vmem:[%s1511_s5 + $0x20] sm:$0xff] }
  0x4b   :  { %255 = vmatprep.subr.mxu0 %v98_v52  ;;  %854 = vmatpush3.msra.mxu1 %v357_v57  ;;  %v457_v57 = vld [vmem:[%s1511_s5 + $0x10] sm:$0xff] }
  0x4c   :  { %256 = vmatpush2.msra.mxu0 %v97_v54  ;;  %855 = vmatprep.subr.mxu1 %v372_v59  ;;  %v455_v59 = vld [vmem:[%s1511_s5] sm:$0xff] }
  0x4d   :  { %257 = vmatprep.subr.mxu0 %v96_v56  ;;  %856 = vmatpush3.msra.mxu1 %v356_v61  ;;  %v458_v56 = vld [vmem:[%s1511_s5 + $0x18] sm:$0xff]  ;;  %v565_v61 = vld [vmem:[%s1513_s7 + $0x70] sm:$0xff] }
  0x4e   :  { %258 = vmatpush2.msra.mxu0 %v95_v58  ;;  %857 = vmatprep.subr.mxu1 %v371_v62  ;;  %v456_v58 = vld [vmem:[%s1511_s5 + $0x8] sm:$0xff] }
  0x4f   :  { %260 = vmatmul.mubr.f32.vlgmr.msra.gmra.mxu0 %v59_v60  ;;  %858 = vmatpush3.msra.mxu1 %v355_v63  ;;  %v566_v60 = vld [vmem:[%s1513_s7 + $0x78] sm:$0xff]  ;;  %v564_v62 = vld [vmem:[%s1513_s7 + $0x68] sm:$0xff]  ;;  %v563_v63 = vld [vmem:[%s1513_s7 + $0x60] sm:$0xff] }
  0x50   :  { %859 = vmatprep.subr.mxu1 %v370_v0  ;;  %938 = vmatprep.subr.mxu0 %v1099_v25  ;;  %v562_v0 = vld [vmem:[%s1513_s7 + $0x58] sm:$0xff] }
  0x51   :  { %860 = vmatpush3.msra.mxu1 %v354_v1  ;;  %939 = vmatpush3.msra.mxu0 %v470_v24  ;;  %v561_v1 = vld [vmem:[%s1513_s7 + $0x50] sm:$0xff]  ;;  %v845_v24 = vld [vmem:[%s1512_s6] ss:$0 sm:$0xff] }
  0x52   :  { %861 = vmatprep.subr.mxu1 %v369_v2  ;;  %940 = vmatprep.subr.mxu0 %v1099_v25  ;;  %v560_v2 = vld [vmem:[%s1513_s7 + $0x48] sm:$0xff] }
  0x53   :  { %862 = vmatpush3.msra.mxu1 %v353_v3  ;;  %941 = vmatpush3.msra.mxu0 %v469_v26  ;;  %v559_v3 = vld [vmem:[%s1513_s7 + $0x40] sm:$0xff] }
  0x54   :  { %863 = vmatprep.subr.mxu1 %v368_v4  ;;  %942 = vmatprep.subr.mxu0 %v1099_v25  ;;  %v558_v4 = vld [vmem:[%s1513_s7 + $0x38] sm:$0xff] }
  0x55   :  { %864 = vmatpush3.msra.mxu1 %v352_v5  ;;  %943 = vmatpush3.msra.mxu0 %v468_v27  ;;  %v557_v5 = vld [vmem:[%s1513_s7 + $0x30] sm:$0xff] }
  0x56   :  { %865 = vmatprep.subr.mxu1 %v367_v6  ;;  %944 = vmatprep.subr.mxu0 %v1099_v25  ;;  %v556_v6 = vld [vmem:[%s1513_s7 + $0x28] sm:$0xff] }
  0x57   :  { %866 = vmatpush3.msra.mxu1 %v351_v7  ;;  %945 = vmatpush3.msra.mxu0 %v467_v28  ;;  %v555_v7 = vld [vmem:[%s1513_s7 + $0x20] sm:$0xff] }
  0x58   :  { %867 = vmatprep.subr.mxu1 %v366_v8  ;;  %946 = vmatprep.subr.mxu0 %v1099_v25  ;;  %v554_v8 = vld [vmem:[%s1513_s7 + $0x18] sm:$0xff] }
  0x59   :  { %868 = vmatpush3.msra.mxu1 %v350_v9  ;;  %947 = vmatpush3.msra.mxu0 %v466_v29 }
  0x5a   :  { %869 = vmatprep.subr.mxu1 %v365_v10  ;;  %948 = vmatprep.subr.mxu0 %v1099_v25  ;;  %v844_v10 = vld [vmem:[%s1510_s4] ss:$0 sm:$0xff] }
  0x5b   :  { %870 = vmatpush3.msra.mxu1 %v349_v11  ;;  %949 = vmatpush3.msra.mxu0 %v465_v30 }
  0x5c   :  { %871 = vmatprep.subr.mxu1 %v364_v12  ;;  %950 = vmatprep.subr.mxu0 %v1099_v25 }
  0x5d   :  { %872 = vmatpush3.msra.mxu1 %v348_v13  ;;  %951 = vmatpush3.msra.mxu0 %v464_v31  ;;  %v649_v31 = vld [vmem:[%s1515_s9 + $0x10] sm:$0xff] }
  0x5e   :  { %873 = vmatprep.subr.mxu1 %v363_v14  ;;  %952 = vmatprep.subr.mxu0 %v1099_v25 }
  0x5f   :  { %874 = vmatpush3.msra.mxu1 %v347_v15  ;;  %953 = vmatpush3.msra.mxu0 %v463_v32  ;;  %v648_v32 = vld [vmem:[%s1515_s9 + $0x8] sm:$0xff] }
  0x60   :  { %875 = vmatprep.subr.mxu1 %v362_v16  ;;  %954 = vmatprep.subr.mxu0 %v1099_v25  ;;  %v553_v16 = vld [vmem:[%s1513_s7 + $0x10] sm:$0xff] }
  0x61   :  { %876 = vmatpush3.msra.mxu1 %v346_v17  ;;  %955 = vmatpush3.msra.mxu0 %v462_v33  ;;  %v552_v17 = vld [vmem:[%s1513_s7 + $0x8] sm:$0xff]  ;;  %v647_v33 = vld [vmem:[%s1515_s9] sm:$0xff] }
  0x62   :  { %877 = vmatprep.subr.mxu1 %v361_v18  ;;  %956 = vmatprep.subr.mxu0 %v1099_v25  ;;  %v551_v18 = vld [vmem:[%s1513_s7] sm:$0xff] }
  0x63   :  { %878 = vmatpush3.msra.mxu1 %v345_v19  ;;  %957 = vmatpush3.msra.mxu0 %v461_v34  ;;  %v654_v19 = vld [vmem:[%s1515_s9 + $0x38] sm:$0xff]  ;;  %v846_v34 = vld [vmem:[%s1514_s8] ss:$0 sm:$0xff] }
  0x64   :  { %879 = vmatprep.subr.mxu1 %v360_v20  ;;  %958 = vmatprep.subr.mxu0 %v1099_v25  ;;  %v653_v20 = vld [vmem:[%s1515_s9 + $0x30] sm:$0xff] }
  0x65   :  { %880 = vmatpush3.msra.mxu1 %v344_v21  ;;  %959 = vmatpush3.msra.mxu0 %v460_v35  ;;  %v652_v21 = vld [vmem:[%s1515_s9 + $0x28] sm:$0xff] }
  0x66   :  { %881 = vmatprep.subr.mxu1 %v359_v22  ;;  %960 = vmatprep.subr.mxu0 %v1099_v25  ;;  %v651_v22 = vld [vmem:[%s1515_s9 + $0x20] sm:$0xff] }
  0x67   :  { %882 = vmatpush3.msra.mxu1 %v343_v23  ;;  %961 = vmatpush3.msra.mxu0 %v459_v55  ;;  %v650_v23 = vld [vmem:[%s1515_s9 + $0x18] sm:$0xff] }
  0x68   :  { %973 = vmatprep.subr.mxu1 %v1099_v25  ;;  %962 = vmatprep.subr.mxu0 %v1099_v25 }
  0x69   :  { %963 = vmatpush3.msra.mxu0 %v458_v56  ;;  %970 = vmatprep.mubr.msk.f32.mxu0 %vm1100_vm3, %v1099_v25 }
  0x6a   :  { %964 = vmatprep.subr.mxu0 %v1099_v25 }
  0x6b   :  { %965 = vmatpush3.msra.mxu0 %v457_v57 }
  0x6c   :  { %966 = vmatprep.subr.mxu0 %v1099_v25 }
  0x6d   :  { %967 = vmatpush3.msra.mxu0 %v456_v58 }
  0x6e   :  { %968 = vmatprep.subr.mxu0 %v1099_v25 }
  0x6f   :  { %969 = vmatpush3.msra.mxu0 %v455_v59 }
  0x70   :  { %1008 = vmatprep.subr.mxu0 %v1099_v25 }
 0x107   :  { %v332_v44 = vpop.f32.mrf.mxu1 }
 0x109   :  { %v334_v49 = vpop.f32.mrf.mxu1 }
 0x10f   :  { %v261_v43 = vpop.f32.mrf.mxu0 }
 0x110   :  { %v262_v45 = vadd.f32 %v261_v43, %v184_v41  ;;  %v745_v41 = vld [vmem:[%s1517_s11 + $0x30] sm:$0xff]  ;;  %v743_v43 = vld [vmem:[%s1517_s11 + $0x20] sm:$0xff] }
 0x111   :  { %v263_v46 = vpop.f32.mrf.mxu0 }
 0x112   :  { %v333_v47 = vadd.f32 %v332_v44, %v262_v45  ;;  %v264_v48 = vadd.f32 %v263_v46, %v188_v42  ;;  %v744_v42 = vld [vmem:[%s1517_s11 + $0x28] sm:$0xff]  ;;  %v742_v44 = vld [vmem:[%s1517_s11 + $0x18] sm:$0xff]  ;;  %v741_v45 = vld [vmem:[%s1517_s11 + $0x10] sm:$0xff] }
 0x113   :  { %v740_v46 = vld [vmem:[%s1517_s11 + $0x8] sm:$0xff] }
 0x114   :  { %v335_v50 = vadd.f32 %v334_v49, %v264_v48  ;;  %v339_v51 = vmul.f32 0.02, %v333_v47  ;;  %vm337_vm1 = vcmp.ge.f32.partialorder %v333_v47, 0.0  ;;  %v847_v48 = vld [vmem:[%s1516_s10] ss:$0 sm:$0xff]  ;;  %s1072_s10 = scalar_lea.vmem %s835_s24, 128 }
 0x115   :  { %p1073_p5 = scmp.ne.s32.totalorder %s835_s24, %s1072_s10  ;;  %p1078_p7 = scmp.lt.s32.totalorder %s1072_s10, %s1072_s10 }
 0x116   :  { %v340_v52 = vmul.f32 0.02, %v335_v50  ;;  %vm338_vm2 = vcmp.ge.f32.partialorder %v335_v50, 0.0  ;;  %v341_v54 = vsel %vm337_vm1, %v333_v47, %v339_v51  ;;  %v739_v47 = vld [vmem:[%s1517_s11] sm:$0xff] }
 0x117   :  { %p1079_p8 = por %p1078_p7, %p1077_p6 }
 0x118   :  { %v342_v53 = vsel %vm338_vm2, %v335_v50, %v340_v52 }
 0x119   :  { %446 = vmatprep.mubr.f32.mxu1 %v342_v53  ;;  %p1080_p9 = pnand %p1079_p8, %p1073_p5 }
 0x11a   :  { %447 = vmatmul.mubr.f32.vlgmr.msra.gmra.mxu1 %v341_v54 }
 0x11b   :  { %1005 = vmatprep.mubr.msk.f32.mxu1 %vm1100_vm3, %v1099_v25  ;;  %974 = vmatpush3.msra.mxu1 %v566_v60 }
 0x11c   :  { %975 = vmatprep.subr.mxu1 %v1099_v25 }
 0x11d   :  { %976 = vmatpush3.msra.mxu1 %v565_v61 }
 0x11e   :  { %977 = vmatprep.subr.mxu1 %v1099_v25 }
 0x11f   :  { %978 = vmatpush3.msra.mxu1 %v564_v62 }
 0x120   :  { %979 = vmatprep.subr.mxu1 %v1099_v25 }
 0x121   :  { %980 = vmatpush3.msra.mxu1 %v563_v63 }
 0x122   :  { %981 = vmatprep.subr.mxu1 %v1099_v25 }
 0x123   :  { %982 = vmatpush3.msra.mxu1 %v562_v0 }
 0x124   :  { %983 = vmatprep.subr.mxu1 %v1099_v25 }
 0x125   :  { %984 = vmatpush3.msra.mxu1 %v561_v1 }
 0x126   :  { %985 = vmatprep.subr.mxu1 %v1099_v25 }
 0x127   :  { %986 = vmatpush3.msra.mxu1 %v560_v2 }
 0x128   :  { %987 = vmatprep.subr.mxu1 %v1099_v25 }
 0x129   :  { %988 = vmatpush3.msra.mxu1 %v559_v3 }
 0x12a   :  { %989 = vmatprep.subr.mxu1 %v1099_v25 }
 0x12b   :  { %990 = vmatpush3.msra.mxu1 %v558_v4 }
 0x12c   :  { %991 = vmatprep.subr.mxu1 %v1099_v25 }
 0x12d   :  { %992 = vmatpush3.msra.mxu1 %v557_v5 }
 0x12e   :  { %993 = vmatprep.subr.mxu1 %v1099_v25 }
 0x12f   :  { %994 = vmatpush3.msra.mxu1 %v556_v6 }
 0x130   :  { %995 = vmatprep.subr.mxu1 %v1099_v25 }
 0x131   :  { %996 = vmatpush3.msra.mxu1 %v555_v7 }
 0x132   :  { %997 = vmatprep.subr.mxu1 %v1099_v25 }
 0x133   :  { %998 = vmatpush3.msra.mxu1 %v554_v8 }
 0x134   :  { %999 = vmatprep.subr.mxu1 %v1099_v25 }
 0x135   :  { %1000 = vmatpush3.msra.mxu1 %v553_v16 }
 0x136   :  { %1001 = vmatprep.subr.mxu1 %v1099_v25 }
 0x137   :  { %1002 = vmatpush3.msra.mxu1 %v552_v17 }
 0x138   :  { %1003 = vmatprep.subr.mxu1 %v1099_v25 }
 0x139   :  { %1004 = vmatpush3.msra.mxu1 %v551_v18 }
 0x1da   :  { %v883_v9 = vpop.f32.mrf.mxu1 }
 0x1dc   :  { %v884_v11 = vpop.f32.mrf.mxu1 }
 0x1dd   :  { %v885_v12 = vadd.f32 %v884_v11, %v883_v9 }
 0x1df   :  { %v449_v13 = vadd.f32 %v885_v12, %v844_v10 }
 0x1e1   :  { %v453_v14 = vmul.f32 0.02, %v449_v13  ;;  %vm452_vm4 = vcmp.ge.f32.partialorder %v449_v13, 0.0 }
 0x1e3   :  { %v454_v15 = vsel %vm452_vm4, %v449_v13, %v453_v14 }
 0x1e4   :  { %971 = vmatmul.mubr.f32.vlgmr.msra.gmra.mxu0 %v454_v15 }
 0x1e5   :  { %1024 = vmatprep.mubr.msk.f32.mxu0 %vm1100_vm3, %v1099_v25  ;;  %1009 = vmatpush3.msra.mxu0 %v654_v19 }
 0x1e6   :  { %1010 = vmatprep.subr.mxu0 %v1099_v25 }
 0x1e7   :  { %1011 = vmatpush3.msra.mxu0 %v653_v20 }
 0x1e8   :  { %1012 = vmatprep.subr.mxu0 %v1099_v25 }
 0x1e9   :  { %1013 = vmatpush3.msra.mxu0 %v652_v21 }
 0x1ea   :  { %1014 = vmatprep.subr.mxu0 %v1099_v25 }
 0x1eb   :  { %1015 = vmatpush3.msra.mxu0 %v651_v22 }
 0x1ec   :  { %1016 = vmatprep.subr.mxu0 %v1099_v25 }
 0x1ed   :  { %1017 = vmatpush3.msra.mxu0 %v650_v23 }
 0x1ee   :  { %1018 = vmatprep.subr.mxu0 %v1099_v25 }
 0x1ef   :  { %1019 = vmatpush3.msra.mxu0 %v649_v31 }
 0x1f0   :  { %1020 = vmatprep.subr.mxu0 %v1099_v25 }
 0x1f1   :  { %1021 = vmatpush3.msra.mxu0 %v648_v32 }
 0x1f2   :  { %1022 = vmatprep.subr.mxu0 %v1099_v25 }
 0x1f3   :  { %1023 = vmatpush3.msra.mxu0 %v647_v33 }
 0x1f4   :  { %1027 = vmatprep.subr.mxu0 %v1099_v25 }
 0x2a4   :  { %v544_v26 = vpop.f32.mrf.mxu0 }
 0x2a5   :  { %v545_v27 = vadd.f32 %v845_v24, %v544_v26 }
 0x2a6   :  { %v972_v28 = vpop.f32.mrf.mxu0 }
 0x2a7   :  { %vm548_vm5 = vcmp.ge.f32.partialorder %v545_v27, 0.0  ;;  %v549_v29 = vmul.f32 0.02, %v545_v27 }
 0x2a9   :  { %v550_v30 = vsel %vm548_vm5, %v545_v27, %v549_v29 }
 0x2aa   :  { %1006 = vmatmul.mubr.f32.vlgmr.msra.gmra.mxu1 %v550_v30 }
 0x36a   :  { %v640_v35 = vpop.f32.mrf.mxu1 }
 0x36b   :  { %v641_v36 = vadd.f32 %v846_v34, %v640_v35 }
 0x36c   :  { %v1007_v37 = vpop.f32.mrf.mxu1 }
 0x36d   :  { %vm644_vm6 = vcmp.ge.f32.partialorder %v641_v36, 0.0  ;;  %v645_v38 = vmul.f32 0.02, %v641_v36 }
 0x36f   :  { %v646_v40 = vsel %vm644_vm6, %v641_v36, %v645_v38 }
 0x370   :  { %1025 = vmatmul.mubr.msk.f32.vlgmr.msra.gmra.mxu0 %vm662_vm7, %v646_v40 }
 0x371   :  { %1028 = vmatpush3.msra.mxu0 %v746_v39  ;;  %1043 = vmatprep.mubr.msk.f32.mxu0 %vm1100_vm3, %v1099_v25 }
 0x372   :  { %1029 = vmatprep.subr.mxu0 %v1099_v25 }
 0x373   :  { %1030 = vmatpush3.msra.mxu0 %v745_v41 }
 0x374   :  { %1031 = vmatprep.subr.mxu0 %v1099_v25 }
 0x375   :  { %1032 = vmatpush3.msra.mxu0 %v744_v42 }
 0x376   :  { %1033 = vmatprep.subr.mxu0 %v1099_v25 }
 0x377   :  { %1034 = vmatpush3.msra.mxu0 %v743_v43 }
 0x378   :  { %1035 = vmatprep.subr.mxu0 %v1099_v25 }
 0x379   :  { %1036 = vmatpush3.msra.mxu0 %v742_v44 }
 0x37a   :  { %1037 = vmatprep.subr.mxu0 %v1099_v25 }
 0x37b   :  { %1038 = vmatpush3.msra.mxu0 %v741_v45 }
 0x37c   :  { %1039 = vmatprep.subr.mxu0 %v1099_v25 }
 0x37d   :  { %1040 = vmatpush3.msra.mxu0 %v740_v46 }
 0x37e   :  { %1041 = vmatprep.subr.mxu0 %v1099_v25  ;;  %v849_v25 = vld [vmem:[%s1518_s12] ss:$0 sm:$0xff] }
 0x37f   :  { %1042 = vmatpush3.msra.mxu0 %v739_v47 }
 0x430   :  { %v732_v49 = vpop.f32.mrf.mxu0 }
 0x431   :  { %v733_v50 = vadd.f32 %v847_v48, %v732_v49 }
 0x432   :  { %v1026_v51 = vpop.f32.mrf.mxu0 }
 0x433   :  { %vm736_vm8 = vcmp.ge.f32.partialorder %v733_v50, 0.0  ;;  %v737_v52 = vmul.f32 0.02, %v733_v50 }
 0x435   :  { %v738_v53 = vsel %vm736_vm8, %v733_v50, %v737_v52 }
 0x436   :  { %1044 = vmatmul.mubr.msk.f32.vlgmr.msra.gmra.mxu0 %vm662_vm7, %v738_v53 }
 0x4f6   :  { %v823_v54 = vpop.f32.mrf.mxu0 }
 0x4f7   :  { %v824_v55 = vadd.f32 %v849_v25, %v823_v54 }
 0x4f8   :  { %v1045_v56 = vpop.f32.mrf.mxu0 }
 0x4f9   :  { %827 = vst [vmem:[#allocation5] sm:$0xff] %v824_v55 }
 0x4fa   :  { %1083 = shalt.err (!%p1080_p9)
}
 0x4fb   :  { %837 = dma.vmem_to_hbm [thread:$0]  %s835_s24, 128, %s1519_s13, [#allocation4]  }
 0x4fc   :  { %1094 = dma.done.wait [#allocation4], 128  }
 0x4fd   :  { %1095 = vsyncadd [#allocation4], 4294967168 }
 0x4fe   :  { %841 = vsyncpa [#allocation3], 1 }
 0x4ff   :  { %842 = vsyncpa [#allocation4], 1 }

</bundles_post_ra>
